<compile_context>
chip_gen: v6e
topology: v6e:2x2x1
jax: 0.10.0
libtpu: 0.0.40
codegen_flags: <defaults>
</compile_context>

<pallas_src>
import jax
import jax.numpy as jnp
from jax.experimental import pallas as pl
from jax.experimental.pallas import tpu as pltpu


# Padding values chosen so the per-element loss of padded entries is exactly 0 in f32:
#   t=1  -> (1-t)*x term vanishes;  x=200 -> softplus(-x)=log1p(exp(-200))==0 (underflow);
#   pos_weight=1 on padded classes -> log_weight irrelevant anyway.
_PAD_LOGIT = 200.0
_PAD_TARGET = 1.0


def _lrloss_kernel(logits_ref, targets_ref, pwm1_ref, out_ref, acc_ref):
    c = pl.program_id(1)

    @pl.when(c == 0)
    def _():
        acc_ref[...] = jnp.zeros_like(acc_ref)

    x = logits_ref[...].astype(jnp.float32)          # (tb, tc)
    t = targets_ref[...].astype(jnp.float32)         # (tb, tc)
    pwm1 = pwm1_ref[pl.ds(c, 1), :]                  # (1, tc) row of resident (pos_weight - 1)

    # log_weight = 1 + (pos_weight - 1) * targets   (pos_weight - 1 hoisted to wrapper)
    log_weight = 1.0 + pwm1 * t
    # Stable softplus(-x) = max(-x, 0) + log1p(exp(-|x|))  -> 2 EUP ops / element
    softplus_neg_x = jnp.maximum(-x, 0.0) + jnp.log1p(jnp.exp(-jnp.abs(x)))
    loss = (1.0 - t) * x + log_weight * softplus_neg_x   # (tb, tc)

    # Lane-dense accumulation: fold the tc classes into 128 lanes with pure VPU adds
    # over static, 128-aligned lane slices (no per-step XLU reduce, no narrow stores).
    n_chunks = loss.shape[1] // 128
    partial = loss[:, 0:128]
    for j in range(1, n_chunks):
        partial = partial + loss[:, j * 128:(j + 1) * 128]
    acc_ref[...] += partial

    @pl.when(c == pl.num_programs(1) - 1)
    def _():
        # Single cross-lane reduce + (tb, 1) store, once per batch tile.
        out_ref[...] = jnp.sum(acc_ref[...], axis=1, keepdims=True)


def _round_up(x, m):
    return ((x + m - 1) // m) * m


def _tpu_generation():
    try:
        kind = jax.devices()[0].device_kind.lower()
    except Exception:
        return "unknown"
    if "v5" in kind:
        return "v5"
    if "v6" in kind:
        return "v6"
    if "v7" in kind or "7x" in kind:
        return "v7"
    return "unknown"


# budget: bytes for the two streamed inputs x 2 pipeline buffers per grid step.
_GEN_CONFIG = {
    "v5":      dict(budget=24 << 20, vmem_limit=64 << 20, tc_cap=1024, prefer_multi=False),
    "v6":      dict(budget=24 << 20, vmem_limit=64 << 20, tc_cap=1024, prefer_multi=False),
    "v7":      dict(budget=16 << 20, vmem_limit=48 << 20, tc_cap=1024, prefer_multi=True),
    "unknown": dict(budget=12 << 20, vmem_limit=40 << 20, tc_cap=512,  prefer_multi=False),
}


def _choose_tc(Cp, cap):
    """Largest multiple of 128 dividing Cp that is <= cap (Cp is a multiple of 128)."""
    best = 128
    d = 128
    while d <= min(cap, Cp):
        if Cp % d == 0:
            best = d
        d += 128
    return best


def _choose_tb(Bp0, tc, itemsize, budget_bytes, prefer_multi, row_cap=2048):
    """Batch tile: multiple of 8, fits the streamed-input VMEM budget, <= 12.5% pad waste."""
    per_row = 2 * 2 * tc * itemsize                      # 2 inputs x 2 pipeline buffers
    cap = max(8, (min(row_cap, budget_bytes // per_row) // 8) * 8)
    tb_max = min(cap, Bp0)
    if prefer_multi and Bp0 >= 16:
        # v7x only: keep >= 2 batch-grid steps so axis 0 can shard across both TensorCores.
        tb_max = min(tb_max, max(8, ((Bp0 // 2) // 8) * 8))
    for tb in range(tb_max, 7, -8):
        if _round_up(Bp0, tb) - Bp0 <= Bp0 // 8:         # bound batch-padding waste
            return tb
    return 8


def lr_loss(logits, targets, pos_weight, *, tb=None, tc=None,
            stream_targets_bf16=False, stream_logits_bf16=False):
    """Pallas implementation of LRLoss.forward.

    logits, targets: (B, C) arrays of matching shape (f32 or bf16).
    pos_weight:      (C,) or scalar, broadcast against targets as in PyTorch.
    stream_*_bf16:   opt-in downcast of the HBM stream (only safe for bf16-exact data,
                     e.g. hard 0/1 targets); kernel math stays f32.
    Returns:         (B,) per-row summed loss, float32.
    """
    if logits.shape != targets.shape:
        raise ValueError(
            "Target size ({}) must be the same as input size ({})".format(
                targets.shape, logits.shape))
    B, C = logits.shape

    if stream_logits_bf16:
        logits = logits.astype(jnp.bfloat16)
    if stream_targets_bf16:
        targets = targets.astype(jnp.bfloat16)

    cfg = _GEN_CONFIG[_tpu_generation()]

    # --- class axis: pad to a multiple of 128, pick a lane-aligned tile ---
    Cp = _round_up(C, 128)
    if tc is None:
        tc = _choose_tc(Cp, cfg["tc_cap"])
    assert Cp % tc == 0 and tc % 128 == 0, "tc must divide padded C and be a multiple of 128"

    # --- batch axis: pad to a multiple of the (multiple-of-8) tile ---
    itemsize = max(jnp.dtype(logits.dtype).itemsize, jnp.dtype(targets.dtype).itemsize)
    Bp0 = _round_up(B, 8)
    if tb is None:
        tb = _choose_tb(Bp0, tc, itemsize, cfg["budget"], cfg["prefer_multi"])
    assert tb % 8 == 0, "tb must be a multiple of 8"
    Bp = _round_up(Bp0, tb)

    pad_b, pad_c = Bp - B, Cp - C
    if pad_b or pad_c:
        logits = jnp.pad(logits, ((0, pad_b), (0, pad_c)), constant_values=_PAD_LOGIT)
        targets = jnp.pad(targets, ((0, pad_b), (0, pad_c)), constant_values=_PAD_TARGET)

    # Pre-shift pos_weight -> (pos_weight - 1); pad classes get pos_weight == 1.
    pwm1 = jnp.broadcast_to(jnp.asarray(pos_weight, jnp.float32), (C,)) - 1.0
    if pad_c:
        pwm1 = jnp.pad(pwm1, (0, pad_c))
    n_ctiles = Cp // tc
    pwm1 = pwm1.reshape(n_ctiles, tc)        # row c == class tile c; kept VMEM-resident

    grid = (Bp // tb, n_ctiles)              # class (reduction) axis last

    # TODO(synk): on v7x, verify with a profile that the batch axis actually shards across
    # both TensorCores under "parallel"; if not, switch axis 0 to pltpu.CORE_PARALLEL.
    # TODO(synk): if tiles are enlarged further, confirm via pl.lower_as_mlir that the f32
    # upcasts / `loss` intermediate stay fused per-vreg (budget assumes they do).
    out = pl.pallas_call(
        _lrloss_kernel,
        out_shape=jax.ShapeDtypeStruct((Bp, 1), jnp.float32),
        grid_spec=pltpu.PrefetchScalarGridSpec(
            num_scalar_prefetch=0,
            grid=grid,
            in_specs=[
                pl.BlockSpec((tb, tc), lambda i, c: (i, c)),        # logits tile
                pl.BlockSpec((tb, tc), lambda i, c: (i, c)),        # targets tile
                pl.BlockSpec((n_ctiles, tc), lambda i, c: (0, 0)),  # (pos_weight-1): resident
            ],
            out_specs=pl.BlockSpec((tb, 1), lambda i, c: (i, 0)),   # resident across c
            scratch_shapes=[pltpu.VMEM((tb, 128), jnp.float32)],    # lane-dense accumulator
        ),
        compiler_params=pltpu.CompilerParams(
            dimension_semantics=("parallel", "arbitrary"),
            vmem_limit_bytes=cfg["vmem_limit"],
        ),
    )(logits, targets, pwm1)
    return out[:B, 0]


def _lr_loss_ref(logits, targets, pos_weight):
    # Pure-JAX reference, mirrors the PyTorch code exactly.
    logits = logits.astype(jnp.float32)
    targets = targets.astype(jnp.float32)
    max_val = jnp.maximum(-logits, 0.0)
    log_weight = 1.0 + (pos_weight - 1.0) * targets
    loss = (1.0 - targets) * logits + log_weight * (
        jnp.log(jnp.exp(-max_val) + jnp.exp(-logits - max_val)) + max_val
    )
    return loss.sum(axis=1)


if __name__ == "__main__":
    key = jax.random.PRNGKey(0)
    k1, k2, k3 = jax.random.split(key, 3)

    # 1) f32 inputs, lane-aligned C.
    B, C = 8, 256
    logits = jax.random.normal(k1, (B, C), dtype=jnp.float32) * 2.0
    targets = (jax.random.uniform(k2, (B, C)) > 0.5).astype(jnp.float32)
    pos_weight = 1.0 + jax.random.uniform(k3, (C,), dtype=jnp.float32) * 2.0
    out = lr_loss(logits, targets, pos_weight)
    jax.block_until_ready(out)
    ref = _lr_loss_ref(logits, targets, pos_weight)
    assert out.shape == (B,)
    assert jnp.allclose(out, ref, rtol=1e-5, atol=1e-4), (out, ref)

    # 2) bf16 streamed inputs (half HBM traffic); kernel upcasts internally.
    lb, tbf = logits.astype(jnp.bfloat16), targets.astype(jnp.bfloat16)
    out_bf = lr_loss(lb, tbf, pos_weight)
    jax.block_until_ready(out_bf)
    ref_bf = _lr_loss_ref(lb, tbf, pos_weight)
    assert jnp.allclose(out_bf, ref_bf, rtol=1e-5, atol=1e-4), (out_bf, ref_bf)

    # 3) Awkward shapes: B not multiple of 8, C not multiple of 128 -> wrapper padding.
    B2, C2 = 14, 40
    l2 = jax.random.normal(k1, (B2, C2), dtype=jnp.float32)
    t2 = (jax.random.uniform(k2, (B2, C2)) > 0.5).astype(jnp.float32)
    pw2 = 1.0 + jax.random.uniform(k3, (C2,), dtype=jnp.float32)
    out2 = lr_loss(l2, t2, pw2)
    jax.block_until_ready(out2)
    ref2 = _lr_loss_ref(l2, t2, pw2)
    assert out2.shape == (B2,)
    assert jnp.allclose(out2, ref2, rtol=1e-5, atol=1e-4), (out2, ref2)

    # 4) Multi-tile grid (explicit small tiles): exercises the class-loop accumulator,
    #    resident pos_weight row indexing, batch padding, and output slicing.
    B3, C3 = 21, 384
    l3 = jax.random.normal(k1, (B3, C3), dtype=jnp.float32)
    t3 = (jax.random.uniform(k2, (B3, C3)) > 0.5).astype(jnp.float32)
    pw3 = 1.0 + jax.random.uniform(k3, (C3,), dtype=jnp.float32) * 2.0
    out3 = lr_loss(l3, t3, pw3, tb=8, tc=128)
    jax.block_until_ready(out3)
    ref3 = _lr_loss_ref(l3, t3, pw3)
    assert out3.shape == (B3,)
    assert jnp.allclose(out3, ref3, rtol=1e-5, atol=1e-4), (out3, ref3)

    # 5) Opt-in bf16 streaming of hard 0/1 targets.
    out4 = lr_loss(logits, targets, pos_weight, stream_targets_bf16=True)
    jax.block_until_ready(out4)
    assert jnp.allclose(out4, ref, rtol=1e-5, atol=1e-4), (out4, ref)

    print("KERNEL_OK")
</pallas_src>

<mosaic_0001>
module attributes {stable_mosaic.version = 11 : i64} {
  func.func @_lrloss_kernel(%arg0: i32, %arg1: i32, %arg2: memref<8x256xf32, #tpu.memory_space<vmem>>, %arg3: memref<8x256xf32, #tpu.memory_space<vmem>>, %arg4: memref<1x256xf32, #tpu.memory_space<vmem>>, %arg5: memref<8x1xf32, #tpu.memory_space<vmem>>, %arg6: memref<8x128xf32, #tpu.memory_space<vmem>>) attributes {dimension_semantics = [#tpu.dimension_semantics<parallel>, #tpu.dimension_semantics<arbitrary>], iteration_bounds = array<i64: 1, 1>, scalar_prefetch = 0 : i64, scratch_operands = 1 : i64, tpu.core_type = #tpu.core_type<tc>, window_params = [{transform_indices = @transform_0, window_bounds = array<i64: 8, 256>}, {transform_indices = @transform_1, window_bounds = array<i64: 8, 256>}, {pipeline_mode = #tpu.pipeline_mode<synchronous>, transform_indices = @transform_2, window_bounds = array<i64: 1, 256>}, {transform_indices = @transform_3, window_bounds = array<i64: 8, 1>}]} {
    %c0_i32 = arith.constant 0 : i32
    %0 = arith.cmpi eq, %arg1, %c0_i32 : i32
    %1 = arith.extui %0 : i1 to i32
    %c0_i32_0 = arith.constant 0 : i32
    %2 = arith.cmpi ne, %1, %c0_i32_0 : i32
    scf.if %2 {
      %cst_15 = arith.constant 0.000000e+00 : f32
      %35 = vector.broadcast %cst_15 : f32 to vector<8x128xf32>
      %c0_16 = arith.constant 0 : index
      %c0_17 = arith.constant 0 : index
      %36 = vector.load %arg6[%c0_16, %c0_17] : memref<8x128xf32, #tpu.memory_space<vmem>>, vector<8x128xf32>
      tpu.vector_store %arg6[%c0_16, %c0_17], %35 {strides = array<i32>} : memref<8x128xf32, #tpu.memory_space<vmem>>, vector<8x128xf32>,
    } else {
    }
    %c0 = arith.constant 0 : index
    %c0_1 = arith.constant 0 : index
    %3 = vector.load %arg2[%c0, %c0_1] : memref<8x256xf32, #tpu.memory_space<vmem>>, vector<8x256xf32>
    %c0_2 = arith.constant 0 : index
    %c0_3 = arith.constant 0 : index
    %4 = vector.load %arg3[%c0_2, %c0_3] : memref<8x256xf32, #tpu.memory_space<vmem>>, vector<8x256xf32>
    %5 = arith.index_cast %arg1 : i32 to index
    %c0_4 = arith.constant 0 : index
    %6 = vector.load %arg4[%5, %c0_4] : memref<1x256xf32, #tpu.memory_space<vmem>>, vector<1x256xf32>
    %7 = vector.broadcast %6 : vector<1x256xf32> to vector<8x256xf32>
    %8 = arith.mulf %7, %4 : vector<8x256xf32>
    %cst = arith.constant 1.000000e+00 : f32
    %9 = vector.broadcast %cst : f32 to vector<8x256xf32>
    %10 = arith.addf %9, %8 : vector<8x256xf32>
    %cst_5 = arith.constant 0.000000e+00 : f32
    %11 = vector.broadcast %cst_5 : f32 to vector<8x256xf32>
    %12 = arith.subf %11, %3 : vector<8x256xf32>
    %cst_6 = arith.constant 0.000000e+00 : f32
    %13 = vector.broadcast %cst_6 : f32 to vector<8x256xf32>
    %14 = arith.maximumf %12, %13 : vector<8x256xf32>
    %15 = math.absf %3 : vector<8x256xf32>
    %cst_7 = arith.constant 0.000000e+00 : f32
    %16 = vector.broadcast %cst_7 : f32 to vector<8x256xf32>
    %17 = arith.subf %16, %15 : vector<8x256xf32>
    %18 = math.exp %17 : vector<8x256xf32>
    %19 = math.log1p %18 : vector<8x256xf32>
    %20 = arith.addf %14, %19 : vector<8x256xf32>
    %cst_8 = arith.constant 1.000000e+00 : f32
    %21 = vector.broadcast %cst_8 : f32 to vector<8x256xf32>
    %22 = arith.subf %21, %4 : vector<8x256xf32>
    %23 = arith.mulf %22, %3 : vector<8x256xf32>
    %24 = arith.mulf %10, %20 : vector<8x256xf32>
    %25 = arith.addf %23, %24 : vector<8x256xf32>
    %26 = vector.extract_strided_slice %25 {offsets = [0, 0], sizes = [8, 128], strides = [1, 1]} : vector<8x256xf32> to vector<8x128xf32>
    %27 = vector.extract_strided_slice %25 {offsets = [0, 128], sizes = [8, 128], strides = [1, 1]} : vector<8x256xf32> to vector<8x128xf32>
    %28 = arith.addf %26, %27 : vector<8x128xf32>
    %c0_9 = arith.constant 0 : index
    %c0_10 = arith.constant 0 : index
    %29 = vector.load %arg6[%c0_9, %c0_10] : memref<8x128xf32, #tpu.memory_space<vmem>>, vector<8x128xf32>
    %30 = arith.addf %29, %28 : vector<8x128xf32>
    %c0_11 = arith.constant 0 : index
    %c0_12 = arith.constant 0 : index
    %31 = vector.load %arg6[%c0_11, %c0_12] : memref<8x128xf32, #tpu.memory_space<vmem>>, vector<8x128xf32>
    tpu.vector_store %arg6[%c0_11, %c0_12], %30 {strides = array<i32>} : memref<8x128xf32, #tpu.memory_space<vmem>>, vector<8x128xf32>,
    %c0_i32_13 = arith.constant 0 : i32
    %32 = arith.cmpi eq, %arg1, %c0_i32_13 : i32
    %33 = arith.extui %32 : i1 to i32
    %c0_i32_14 = arith.constant 0 : i32
    %34 = arith.cmpi ne, %33, %c0_i32_14 : i32
    scf.if %34 {
      %c0_15 = arith.constant 0 : index
      %c0_16 = arith.constant 0 : index
      %35 = vector.load %arg6[%c0_15, %c0_16] : memref<8x128xf32, #tpu.memory_space<vmem>>, vector<8x128xf32>
      %cst_17 = arith.constant dense<0.000000e+00> : vector<8xf32>
      %36 = vector.multi_reduction <add>, %35, %cst_17 [1] : vector<8x128xf32> to vector<8xf32>
      %37 = vector.shape_cast %36 : vector<8xf32> to vector<8x1xf32>
      %c0_18 = arith.constant 0 : index
      %c0_19 = arith.constant 0 : index
      %38 = vector.load %arg5[%c0_18, %c0_19] : memref<8x1xf32, #tpu.memory_space<vmem>>, vector<8x1xf32>
      tpu.vector_store %arg5[%c0_18, %c0_19], %37 {strides = array<i32>} : memref<8x1xf32, #tpu.memory_space<vmem>>, vector<8x1xf32>,
    } else {
    }
    return
  }
  func.func @transform_0(%arg0: i32, %arg1: i32) -> (i32, i32) {
    %c0_i32 = arith.constant 0 : i32
    return %arg0, %arg1 : i32, i32
  }
  func.func @transform_1(%arg0: i32, %arg1: i32) -> (i32, i32) {
    %c0_i32 = arith.constant 0 : i32
    return %arg0, %arg1 : i32, i32
  }
  func.func @transform_2(%arg0: i32, %arg1: i32) -> (i32, i32) {
    %c0_i32 = arith.constant 0 : i32
    %c0_i32_0 = arith.constant 0 : i32
    %c0_i32_1 = arith.constant 0 : i32
    return %c0_i32, %c0_i32_0 : i32, i32
  }
  func.func @transform_3(%arg0: i32, %arg1: i32) -> (i32, i32) {
    %c0_i32 = arith.constant 0 : i32
    %c0_i32_0 = arith.constant 0 : i32
    return %arg0, %c0_i32 : i32, i32
  }
}

</mosaic_0001>

<bundles_post_ra>
// kernel: tpu_custom_call.1
= control target key start
LH: loop header
LB: loop body
LE: loop exit
PB: predicated region body
PF: predicated region fallthrough
CT: control target
= control target key end

     0   :  { %8 = vsyncpa [#allocation4], 0  ;;  %s211_s0 = inlined_call_operand.hbm [shape: f32[8,256], index: 0, kind: input, shape index: {}]   ;;  %s212_s1 = inlined_call_operand.hbm [shape: f32[8,256], index: 1, kind: input, shape index: {}]   ;;  %s213_s2 = inlined_call_operand.vmem [shape: f32[1,256], index: 2, kind: input, shape index: {}]   ;;  %s214_s3 = inlined_call_operand.vmem [shape: f32[8,1], index: 3, kind: output, shape index: {}]  }
   0x1   :  { %9 = vsyncpa [#allocation6], 0  ;;  %s177_s12 = smov [#allocation3]   ;;  %s178_s14 = smov [#allocation5]  }
   0x2   :  { %s16_s13 = sshll.u32 %s177_s12, 4  ;;  %s26_s15 = sshll.u32 %s178_s14, 4  ;;  %s17_s13 = int_to_ptr.vmem [resolvable:$true] %s16_s13  ;;  %s27_s15 = int_to_ptr.vmem [resolvable:$true] %s26_s15 }
   0x3   :  { %s141_s16 = scalar_lea.vmem %s17_s13, 256  ;;  %p146_p1 = scmp.lt.s32.totalorder %s17_s13, %s17_s13 }
   0x4   :  { %p142_p0 = scmp.ne.s32.totalorder %s17_s13, %s141_s16  ;;  %p147_p2 = scmp.lt.s32.totalorder %s141_s16, %s141_s16 }
   0x6   :  { %p148_p3 = por %p147_p2, %p146_p1 }
   0x8   :  { %p149_p4 = pnand %p148_p3, %p142_p0 }
   0xa   :  { %152 = shalt.err (!%p149_p4)
}
   0xb   :  { %19 = dma.hbm_to_vmem [thread:$0]  %s211_s0, 256, %s17_s13, [#allocation4]  }
   0xc   :  { %s161_s19 = scalar_lea.vmem %s27_s15, 256  ;;  %p166_p6 = scmp.lt.s32.totalorder %s27_s15, %s27_s15 }
   0xd   :  { %p162_p5 = scmp.ne.s32.totalorder %s27_s15, %s161_s19  ;;  %p167_p7 = scmp.lt.s32.totalorder %s161_s19, %s161_s19 }
   0xf   :  { %p168_p8 = por %p167_p7, %p166_p6 }
  0x11   :  { %p169_p9 = pnand %p168_p8, %p162_p5 }
  0x13   :  { %172 = shalt.err (!%p169_p9)
}
  0x14   :  { %29 = dma.hbm_to_vmem [thread:$0]  %s212_s1, 256, %s27_s15, [#allocation6]  }
  0x15   :  { %173 = dma.done.wait [#allocation4], 256  }
  0x16   :  { %174 = vsyncadd [#allocation4], 4294967040 }
  0x17   :  { %175 = dma.done.wait [#allocation6], 256  }
  0x18   :  { %176 = vsyncadd [#allocation6], 4294967040  ;;  %v43_v0 = vld [vmem:[#allocation3] sm:$0xff]  ;;  %v44_v1 = vld [vmem:[#allocation3 + $0x8] sm:$0xff]  ;;  %v51_v8 = vlaneseq  ;;  %vm115_vm2 = vcmask 7168  }
  0x19   :  { %v69_v2 = vand.u32 2147483647, %v43_v0  ;;  %v70_v3 = vand.u32 2147483647, %v44_v1  ;;  %v49_v15 = vld [vmem:[%s213_s2] sm:$0x3] }
  0x1a   :  { %v52_v12 = vshrl.u32 %v51_v8, 7  ;;  %v45_v20 = vld [vmem:[#allocation5] sm:$0xff]  ;;  %v46_v23 = vld [vmem:[#allocation5 + $0x8] sm:$0xff]  ;;  %v65_v24 = vsub.f32 0.0, %v43_v0  ;;  %v66_v27 = vsub.f32 0.0, %v44_v1 }
  0x1b   :  { %v71_v4 = vsub.f32 0.0, %v69_v2  ;;  %v72_v5 = vsub.f32 0.0, %v70_v3  ;;  %v97_v35 = vsub.f32 1.0, %v45_v20  ;;  %v98_v39 = vsub.f32 1.0, %v46_v23 }
  0x1c   :  { %v53_v14 = vsub.s32 0, %v52_v12  ;;  %v57_v16 = vsub.s32 1, %v52_v12  ;;  %v67_v33 = vmax.f32 %v65_v24, 0.0  ;;  %v68_v37 = vmax.f32 %v66_v27, 0.0 }
  0x1d   :  { %v73_v6 = vmul.f32 1.442695, %v71_v4  ;;  %v75_v7 = vmul.f32 1.442695, %v72_v5  ;;  %v99_v46 = vmul.f32 %v97_v35, %v43_v0  ;;  %v100_v48 = vmul.f32 %v98_v39, %v44_v1 }
  0x1e   :  { %v54_v19 = vrot.slane %v49_v15, %v53_v14  ;;  %v58_v21 = vrot.slane %v49_v15, %v57_v16 }
  0x1f   :  { %125 = vpow2.f32 %v73_v6 }
  0x20   :  { %127 = vpow2.f32 %v75_v7  ;;  %v61_v29 = vmul.f32 %v54_v19, %v45_v20  ;;  %v62_v30 = vmul.f32 %v58_v21, %v46_v23 }
  0x22   :  { %v63_v40 = vadd.f32 1.0, %v61_v29  ;;  %v64_v42 = vadd.f32 1.0, %v62_v30 }
  0x2c   :  { %v126_v9 = vpop.eup %125 }
  0x2d   :  { %v128_v10 = vpop.eup %127  ;;  %v77_v11 = vadd.f32 1.0, %v126_v9  ;;  %v80_v17 = vmul.f32 -0.5, %v126_v9  ;;  %v83_v25 = vand.u32 2147483647, %v126_v9 }
  0x2e   :  { %v86_v13 = vadd.f32 1.0, %v128_v10  ;;  %v89_v18 = vmul.f32 -0.5, %v128_v10  ;;  %v92_v28 = vand.u32 2147483647, %v128_v10 }
  0x2f   :  { %129 = vlog2.f32 %v77_v11  ;;  %v81_v22 = vadd.f32 1.0, %v80_v17  ;;  %vm84_vm0 = vcmp.lt.f32.partialorder %v83_v25, 0.0004427343 }
  0x30   :  { %131 = vlog2.f32 %v86_v13  ;;  %v90_v26 = vadd.f32 1.0, %v89_v18  ;;  %vm93_vm1 = vcmp.lt.f32.partialorder %v92_v28, 0.0004427343 }
  0x31   :  { %v82_v31 = vmul.f32 %v126_v9, %v81_v22 }
  0x32   :  { %v91_v34 = vmul.f32 %v128_v10, %v90_v26 }
  0x3c   :  { %v130_v32 = vpop.eup %129 }
  0x3d   :  { %v132_v36 = vpop.eup %131  ;;  %v79_v38 = vmul.f32 0.6931472, %v130_v32 }
  0x3e   :  { %v88_v41 = vmul.f32 0.6931472, %v132_v36 }
  0x3f   :  { %v85_v43 = vsel %vm84_vm0, %v82_v31, %v79_v38 }
  0x40   :  { %v94_v44 = vsel %vm93_vm1, %v91_v34, %v88_v41  ;;  %v95_v45 = vadd.f32 %v85_v43, %v67_v33 }
  0x41   :  { %v96_v47 = vadd.f32 %v94_v44, %v68_v37 }
  0x42   :  { %v101_v49 = vmul.f32 %v95_v45, %v63_v40 }
  0x43   :  { %v102_v50 = vmul.f32 %v96_v47, %v64_v42 }
  0x44   :  { %v103_v51 = vadd.f32 %v101_v49, %v99_v46 }
  0x45   :  { %v104_v52 = vadd.f32 %v102_v50, %v100_v48 }
  0x47   :  { %v105_v53 = vadd.f32 %v104_v52, %v103_v51 }
  0x49   :  { %113 = vadd.xlane.f32.xlu0 %v105_v53 }
  0xd2   :  { %v114_v54 = vpop.xlane.xlu0 %113 }
  0xd3   :  { %116 = vst.msk [vmem:[%s214_s3] sm:$0xff] %vm115_vm2, %v114_v54 }
  0xd4   :  { %121 = vsyncpa [#allocation4], 1 }
  0xd5   :  { %122 = vsyncpa [#allocation6], 1 }

</bundles_post_ra>
